<compile_context>
chip_gen: v5e
topology: v5e:2x2
jax: 0.10.0
libtpu: 0.0.40
codegen_flags: <defaults>
</compile_context>

<pallas_src>
import jax
import jax.numpy as jnp
from jax.experimental import pallas as pl
from jax.experimental.pallas import tpu as pltpu

_LANE = 512           # lane-dense width (4 * 128)
_MAX_ROW_BLOCK = 512  # 512*512*4B = 1 MiB per f32 buffer


def _round_up(a, b):
    return -(-a // b) * b


def _po2_threshold(absmax):
    """Power-of-two threshold 2^ceil(log2(absmax)) (brevitas fixed-point restrict)."""
    eps = jnp.float32(1e-30)
    return jnp.exp2(jnp.ceil(jnp.log2(jnp.maximum(absmax, eps))))


def _fp_scales(absmax, bit_width, signed):
    """Quant scale and its exact reciprocal (both exact powers of two)."""
    threshold = _po2_threshold(absmax)
    int_scale = jnp.float32(2.0 ** (bit_width - 1) if signed else 2.0 ** bit_width)
    return threshold / int_scale, int_scale / threshold


def _fq_scalar(v, scale, inv_scale, qmin, qmax):
    return jnp.clip(jnp.round(v * inv_scale), qmin, qmax) * scale


# --------------------- Pass 1: tiled global max / min ----------------------
def _minmax_kernel(x_ref, max_ref, min_ref):
    i = pl.program_id(0)
    xt = x_ref[...].astype(jnp.float32)
    tmax = jnp.max(xt).reshape(1, 1)
    tmin = jnp.min(xt).reshape(1, 1)

    @pl.when(i == 0)
    def _():
        max_ref[...] = tmax
        min_ref[...] = tmin

    @pl.when(i > 0)
    def _():
        max_ref[...] = jnp.maximum(max_ref[...], tmax)
        min_ref[...] = jnp.minimum(min_ref[...], tmin)


# ------------- Pass 2: fused elementwise fake-quant leaky relu -------------
def _apply_kernel(p_ref, x_ref, out_ref):
    # p_ref (SMEM f32[8]): [inv_si, si, q_alpha, inv_sp, sp, inv_so, so, 0]
    x = x_ref[...].astype(jnp.float32)
    inv_si, si = p_ref[0], p_ref[1]
    alpha = p_ref[2]
    inv_sp, sp = p_ref[3], p_ref[4]
    inv_so, so = p_ref[5], p_ref[6]

    qi = jnp.clip(jnp.round(x * inv_si), -32768.0, 32767.0) * si            # int16 fq
    qa = jnp.clip(jnp.round((qi * alpha) * inv_sp), -32768.0, 32767.0) * sp  # int16 fq
    out = jnp.maximum(qi, qa)                                                # leaky relu
    out_ref[...] = jnp.clip(jnp.round(out * inv_so), -128.0, 127.0) * so     # int8 fq


def _flexml_quant_leaky_relu(x_nchw, negative_slope):
    orig_shape = x_nchw.shape
    total = x_nchw.size

    rows = _round_up(max(total, 1), _LANE) // _LANE
    row_block = min(_MAX_ROW_BLOCK, _round_up(rows, 8))
    rows_pad = _round_up(_round_up(rows, 8), row_block)
    n_tiles = rows_pad // row_block

    x_flat = x_nchw.reshape(-1)
    pad = rows_pad * _LANE - total
    if pad:
        x_flat = jnp.pad(x_flat, (0, pad))
    x2d = x_flat.reshape(rows_pad, _LANE)

    # ---- Pass 1: the only full-tensor reduction (max & min of x). ----
    max_x, min_x = pl.pallas_call(
        _minmax_kernel,
        out_shape=(jax.ShapeDtypeStruct((1, 1), jnp.float32),
                   jax.ShapeDtypeStruct((1, 1), jnp.float32)),
        grid=(n_tiles,),
        in_specs=[pl.BlockSpec((row_block, _LANE), lambda i: (i, 0))],
        out_specs=(pl.BlockSpec((1, 1), lambda i: (0, 0)),
                   pl.BlockSpec((1, 1), lambda i: (0, 0))),
        compiler_params=pltpu.CompilerParams(dimension_semantics=("arbitrary",)),
    )(x2d)
    max_x = max_x[0, 0]
    min_x = min_x[0, 0]

    # ---- Scalar epilogue: derive all quant scales from max/min + alpha. ----
    alpha = jnp.asarray(negative_slope, jnp.float32)
    a_scale, a_inv = _fp_scales(jnp.abs(alpha), 16, signed=False)   # uint16 alpha quant
    q_alpha = _fq_scalar(alpha, a_scale, a_inv, 0.0, 65535.0)       # >= 0

    absmax_x = jnp.maximum(jnp.abs(max_x), jnp.abs(min_x))
    si, inv_si = _fp_scales(absmax_x, 16, signed=True)              # input quant scale
    qi_max = _fq_scalar(max_x, si, inv_si, -32768.0, 32767.0)
    qi_min = _fq_scalar(min_x, si, inv_si, -32768.0, 32767.0)

    absmax_prod = jnp.maximum(jnp.abs(qi_max), jnp.abs(qi_min)) * q_alpha
    sp, inv_sp = _fp_scales(absmax_prod, 16, signed=True)           # quant of qi*alpha
    out_max = jnp.maximum(qi_max,
                          _fq_scalar(qi_max * q_alpha, sp, inv_sp, -32768.0, 32767.0))
    out_min = jnp.maximum(qi_min,
                          _fq_scalar(qi_min * q_alpha, sp, inv_sp, -32768.0, 32767.0))

    absmax_out = jnp.maximum(jnp.abs(out_max), jnp.abs(out_min))
    so, inv_so = _fp_scales(absmax_out, 8, signed=True)             # output quant scale

    params = jnp.stack([inv_si, si, q_alpha, inv_sp, sp, inv_so, so,
                        jnp.float32(0.0)]).astype(jnp.float32)

    # ---- Pass 2: streaming elementwise apply (HBM-bound, megacore-parallel). ----
    out2d = pl.pallas_call(
        _apply_kernel,
        out_shape=jax.ShapeDtypeStruct((rows_pad, _LANE), jnp.float32),
        grid=(n_tiles,),
        in_specs=[
            pl.BlockSpec(memory_space=pltpu.MemorySpace.SMEM),    # scalar params
            pl.BlockSpec((row_block, _LANE), lambda i: (i, 0)),   # x tile
        ],
        out_specs=pl.BlockSpec((row_block, _LANE), lambda i: (i, 0)),
        compiler_params=pltpu.CompilerParams(dimension_semantics=("parallel",)),
    )(params, x2d)

    out = out2d.reshape(-1)[:total].reshape(orig_shape)
    # TODO(synk): brevitas returns a QuantTensor (value, scale, zero_point=0,
    # bit_width=8, signed=True, training flag); we return (value, scale) only.
    return out, so


flexml_quant_leaky_relu = jax.jit(_flexml_quant_leaky_relu)


# Pure-JAX reference with the original three abs-max reductions (validates the
# scalar-derived-scale optimization, incl. monotonicity corner cases).
def _reference(x_nchw, negative_slope):
    def fq(v, absmax, bw, signed):
        thr = _po2_threshold(absmax)
        if signed:
            s = thr / jnp.float32(2.0 ** (bw - 1))
            lo, hi = -(2.0 ** (bw - 1)), 2.0 ** (bw - 1) - 1.0
        else:
            s = thr / jnp.float32(2.0 ** bw)
            lo, hi = 0.0, 2.0 ** bw - 1.0
        return jnp.clip(jnp.round(v / s), lo, hi) * s, s

    x = x_nchw.astype(jnp.float32)
    alpha = jnp.asarray(negative_slope, jnp.float32)
    q_alpha, _ = fq(alpha, jnp.abs(alpha), 16, False)
    qi, _ = fq(x, jnp.max(jnp.abs(x)), 16, True)
    prod = qi * q_alpha
    qa, _ = fq(prod, jnp.max(jnp.abs(prod)), 16, True)
    out = jnp.maximum(qi, qa)
    return fq(out, jnp.max(jnp.abs(out)), 8, True)


if __name__ == "__main__":
    key = jax.random.PRNGKey(0)
    x = jax.random.normal(key, (2, 4, 16, 16), dtype=jnp.float32)  # NCHW
    negative_slope = 0.1

    out, scale = flexml_quant_leaky_relu(x, negative_slope)
    out = jax.block_until_ready(out)
    scale = jax.block_until_ready(scale)

    ref_out, ref_scale = _reference(x, negative_slope)

    assert out.shape == x.shape and out.dtype == jnp.float32
    assert bool(jnp.all(jnp.isfinite(out)))
    assert bool(jnp.allclose(out, ref_out, rtol=1e-6, atol=1e-6)), \
        "kernel output mismatch vs three-reduction reference"
    assert bool(jnp.allclose(scale, ref_scale, rtol=1e-6, atol=0.0)), \
        "output scale mismatch vs reference"
    print("KERNEL_OK")
</pallas_src>

<mosaic_0001>
module attributes {stable_mosaic.version = 11 : i64} {
  func.func @_minmax_kernel(%arg0: i32, %arg1: memref<8x512xf32, #tpu.memory_space<vmem>>, %arg2: memref<1x1xf32, #tpu.memory_space<vmem>>, %arg3: memref<1x1xf32, #tpu.memory_space<vmem>>) attributes {dimension_semantics = [#tpu.dimension_semantics<arbitrary>], iteration_bounds = array<i64: 1>, scalar_prefetch = 0 : i64, scratch_operands = 0 : i64, tpu.core_type = #tpu.core_type<tc>, window_params = [{transform_indices = @transform_0, window_bounds = array<i64: 8, 512>}, {pipeline_mode = #tpu.pipeline_mode<synchronous>, transform_indices = @transform_1, window_bounds = array<i64: 1, 1>}, {pipeline_mode = #tpu.pipeline_mode<synchronous>, transform_indices = @transform_2, window_bounds = array<i64: 1, 1>}]} {
    %c0 = arith.constant 0 : index
    %c0_0 = arith.constant 0 : index
    %0 = vector.load %arg1[%c0, %c0_0] : memref<8x512xf32, #tpu.memory_space<vmem>>, vector<8x512xf32>
    %1 = vector.shape_cast %0 : vector<8x512xf32> to vector<1x8x512xf32>
    %cst = arith.constant dense<0xFF800000> : vector<1xf32>
    %2 = vector.multi_reduction <maximumf>, %1, %cst [1, 2] : vector<1x8x512xf32> to vector<1xf32>
    %3 = vector.shape_cast %2 : vector<1xf32> to vector<1x1x1xf32>
    %4 = vector.extract %3[0, 0, 0] : f32 from vector<1x1x1xf32>
    %5 = vector.broadcast %4 : f32 to vector<1x1xf32>
    %6 = vector.shape_cast %0 : vector<8x512xf32> to vector<1x8x512xf32>
    %cst_1 = arith.constant dense<0x7F800000> : vector<1xf32>
    %7 = vector.multi_reduction <minimumf>, %6, %cst_1 [1, 2] : vector<1x8x512xf32> to vector<1xf32>
    %8 = vector.shape_cast %7 : vector<1xf32> to vector<1x1x1xf32>
    %9 = vector.extract %8[0, 0, 0] : f32 from vector<1x1x1xf32>
    %10 = vector.broadcast %9 : f32 to vector<1x1xf32>
    %c0_i32 = arith.constant 0 : i32
    %11 = arith.cmpi eq, %arg0, %c0_i32 : i32
    %12 = arith.extui %11 : i1 to i32
    %c0_i32_2 = arith.constant 0 : i32
    %13 = arith.cmpi ne, %12, %c0_i32_2 : i32
    scf.if %13 {
      %c0_5 = arith.constant 0 : index
      %c0_6 = arith.constant 0 : index
      %17 = vector.load %arg2[%c0_5, %c0_6] : memref<1x1xf32, #tpu.memory_space<vmem>>, vector<1x1xf32>
      tpu.vector_store %arg2[%c0_5, %c0_6], %5 {strides = array<i32>} : memref<1x1xf32, #tpu.memory_space<vmem>>, vector<1x1xf32>,
      %c0_7 = arith.constant 0 : index
      %c0_8 = arith.constant 0 : index
      %18 = vector.load %arg3[%c0_7, %c0_8] : memref<1x1xf32, #tpu.memory_space<vmem>>, vector<1x1xf32>
      tpu.vector_store %arg3[%c0_7, %c0_8], %10 {strides = array<i32>} : memref<1x1xf32, #tpu.memory_space<vmem>>, vector<1x1xf32>,
    } else {
    }
    %c0_i32_3 = arith.constant 0 : i32
    %14 = arith.cmpi sgt, %arg0, %c0_i32_3 : i32
    %15 = arith.extui %14 : i1 to i32
    %c0_i32_4 = arith.constant 0 : i32
    %16 = arith.cmpi ne, %15, %c0_i32_4 : i32
    scf.if %16 {
      %c0_5 = arith.constant 0 : index
      %c0_6 = arith.constant 0 : index
      %17 = vector.load %arg2[%c0_5, %c0_6] : memref<1x1xf32, #tpu.memory_space<vmem>>, vector<1x1xf32>
      %18 = arith.maximumf %17, %5 : vector<1x1xf32>
      %c0_7 = arith.constant 0 : index
      %c0_8 = arith.constant 0 : index
      %19 = vector.load %arg2[%c0_7, %c0_8] : memref<1x1xf32, #tpu.memory_space<vmem>>, vector<1x1xf32>
      tpu.vector_store %arg2[%c0_7, %c0_8], %18 {strides = array<i32>} : memref<1x1xf32, #tpu.memory_space<vmem>>, vector<1x1xf32>,
      %c0_9 = arith.constant 0 : index
      %c0_10 = arith.constant 0 : index
      %20 = vector.load %arg3[%c0_9, %c0_10] : memref<1x1xf32, #tpu.memory_space<vmem>>, vector<1x1xf32>
      %21 = arith.minimumf %20, %10 : vector<1x1xf32>
      %c0_11 = arith.constant 0 : index
      %c0_12 = arith.constant 0 : index
      %22 = vector.load %arg3[%c0_11, %c0_12] : memref<1x1xf32, #tpu.memory_space<vmem>>, vector<1x1xf32>
      tpu.vector_store %arg3[%c0_11, %c0_12], %21 {strides = array<i32>} : memref<1x1xf32, #tpu.memory_space<vmem>>, vector<1x1xf32>,
    } else {
    }
    return
  }
  func.func @transform_0(%arg0: i32) -> (i32, i32) {
    %c0_i32 = arith.constant 0 : i32
    %c0_i32_0 = arith.constant 0 : i32
    return %arg0, %c0_i32 : i32, i32
  }
  func.func @transform_1(%arg0: i32) -> (i32, i32) {
    %c0_i32 = arith.constant 0 : i32
    %c0_i32_0 = arith.constant 0 : i32
    %c0_i32_1 = arith.constant 0 : i32
    return %c0_i32, %c0_i32_0 : i32, i32
  }
  func.func @transform_2(%arg0: i32) -> (i32, i32) {
    %c0_i32 = arith.constant 0 : i32
    %c0_i32_0 = arith.constant 0 : i32
    %c0_i32_1 = arith.constant 0 : i32
    return %c0_i32, %c0_i32_0 : i32, i32
  }
}

module attributes {stable_mosaic.version = 11 : i64} {
  func.func @_apply_kernel(%arg0: i32, %arg1: memref<8xf32, #tpu.memory_space<smem>>, %arg2: memref<8x512xf32, #tpu.memory_space<vmem>>, %arg3: memref<8x512xf32, #tpu.memory_space<vmem>>) attributes {dimension_semantics = [#tpu.dimension_semantics<parallel>], iteration_bounds = array<i64: 1>, scalar_prefetch = 0 : i64, scratch_operands = 0 : i64, tpu.core_type = #tpu.core_type<tc>, window_params = [{transform_indices = @transform_0, window_bounds = array<i64: 8>}, {transform_indices = @transform_1, window_bounds = array<i64: 8, 512>}, {transform_indices = @transform_2, window_bounds = array<i64: 8, 512>}]} {
    %c0 = arith.constant 0 : index
    %c0_0 = arith.constant 0 : index
    %0 = vector.load %arg2[%c0, %c0_0] : memref<8x512xf32, #tpu.memory_space<vmem>>, vector<8x512xf32>
    %c0_1 = arith.constant 0 : index
    %1 = memref.load %arg1[%c0_1] : memref<8xf32, #tpu.memory_space<smem>>
    %c1 = arith.constant 1 : index
    %2 = memref.load %arg1[%c1] : memref<8xf32, #tpu.memory_space<smem>>
    %c2 = arith.constant 2 : index
    %3 = memref.load %arg1[%c2] : memref<8xf32, #tpu.memory_space<smem>>
    %c3 = arith.constant 3 : index
    %4 = memref.load %arg1[%c3] : memref<8xf32, #tpu.memory_space<smem>>
    %c4 = arith.constant 4 : index
    %5 = memref.load %arg1[%c4] : memref<8xf32, #tpu.memory_space<smem>>
    %c5 = arith.constant 5 : index
    %6 = memref.load %arg1[%c5] : memref<8xf32, #tpu.memory_space<smem>>
    %c6 = arith.constant 6 : index
    %7 = memref.load %arg1[%c6] : memref<8xf32, #tpu.memory_space<smem>>
    %8 = vector.broadcast %1 : f32 to vector<8x512xf32>
    %9 = arith.mulf %0, %8 : vector<8x512xf32>
    %10 = math.roundeven %9 : vector<8x512xf32>
    %cst = arith.constant -3.276800e+04 : f32
    %cst_2 = arith.constant 3.276700e+04 : f32
    %11 = vector.broadcast %cst : f32 to vector<8x512xf32>
    %12 = arith.maximumf %11, %10 : vector<8x512xf32>
    %13 = vector.broadcast %cst_2 : f32 to vector<8x512xf32>
    %14 = arith.minimumf %13, %12 : vector<8x512xf32>
    %15 = vector.broadcast %2 : f32 to vector<8x512xf32>
    %16 = arith.mulf %14, %15 : vector<8x512xf32>
    %17 = vector.broadcast %3 : f32 to vector<8x512xf32>
    %18 = arith.mulf %16, %17 : vector<8x512xf32>
    %19 = vector.broadcast %4 : f32 to vector<8x512xf32>
    %20 = arith.mulf %18, %19 : vector<8x512xf32>
    %21 = math.roundeven %20 : vector<8x512xf32>
    %cst_3 = arith.constant -3.276800e+04 : f32
    %cst_4 = arith.constant 3.276700e+04 : f32
    %22 = vector.broadcast %cst_3 : f32 to vector<8x512xf32>
    %23 = arith.maximumf %22, %21 : vector<8x512xf32>
    %24 = vector.broadcast %cst_4 : f32 to vector<8x512xf32>
    %25 = arith.minimumf %24, %23 : vector<8x512xf32>
    %26 = vector.broadcast %5 : f32 to vector<8x512xf32>
    %27 = arith.mulf %25, %26 : vector<8x512xf32>
    %28 = arith.maximumf %16, %27 : vector<8x512xf32>
    %29 = vector.broadcast %6 : f32 to vector<8x512xf32>
    %30 = arith.mulf %28, %29 : vector<8x512xf32>
    %31 = math.roundeven %30 : vector<8x512xf32>
    %cst_5 = arith.constant -1.280000e+02 : f32
    %cst_6 = arith.constant 1.270000e+02 : f32
    %32 = vector.broadcast %cst_5 : f32 to vector<8x512xf32>
    %33 = arith.maximumf %32, %31 : vector<8x512xf32>
    %34 = vector.broadcast %cst_6 : f32 to vector<8x512xf32>
    %35 = arith.minimumf %34, %33 : vector<8x512xf32>
    %36 = vector.broadcast %7 : f32 to vector<8x512xf32>
    %37 = arith.mulf %35, %36 : vector<8x512xf32>
    %c0_7 = arith.constant 0 : index
    %c0_8 = arith.constant 0 : index
    %38 = vector.load %arg3[%c0_7, %c0_8] : memref<8x512xf32, #tpu.memory_space<vmem>>, vector<8x512xf32>
    tpu.vector_store %arg3[%c0_7, %c0_8], %37 {strides = array<i32>} : memref<8x512xf32, #tpu.memory_space<vmem>>, vector<8x512xf32>,
    return
  }
  func.func @transform_0(%arg0: i32) -> i32 {
    %c0_i32 = arith.constant 0 : i32
    %c0_i32_0 = arith.constant 0 : i32
    return %c0_i32 : i32
  }
  func.func @transform_1(%arg0: i32) -> (i32, i32) {
    %c0_i32 = arith.constant 0 : i32
    %c0_i32_0 = arith.constant 0 : i32
    return %arg0, %c0_i32 : i32, i32
  }
  func.func @transform_2(%arg0: i32) -> (i32, i32) {
    %c0_i32 = arith.constant 0 : i32
    %c0_i32_0 = arith.constant 0 : i32
    return %arg0, %c0_i32 : i32, i32
  }
}

</mosaic_0001>

<bundles_post_ra>
// kernel: _flexml_quant_leaky_relu.3
= control target key start
LH: loop header
LB: loop body
LE: loop exit
PB: predicated region body
PF: predicated region fallthrough
CT: control target
= control target key end

     0   :  { %7 = vsyncpa [#allocation3], 0  ;;  %s236_s12 = smov [#allocation2]   ;;  %s316_s0 = inlined_call_operand.vmem [shape: f32[8], index: 0, kind: input, shape index: {}]   ;;  %s317_s1 = inlined_call_operand.vmem [shape: f32[8,512], index: 1, kind: input, shape index: {}]   ;;  %s318_s2 = inlined_call_operand.vmem [shape: f32[8,512], index: 2, kind: output, shape index: {}]  }
   0x1   :  { %s13_s11 = sshll.u32 %s316_s0, 4  ;;  %s14_s11 = int_to_ptr.vmem [resolvable:$true] %s13_s11 }
   0x2   :  { %16 = dma.vmem_to_smem %s14_s11, 16, %s236_s12, [#allocation3]  }
   0x3   :  { %234 = dma.done.wait [#allocation3], 16  }
   0x4   :  { %235 = vsyncadd [#allocation3], 4294967280 }
   0x5   :  { %23 = sfence }
   0x6   :  { %s28_s13 = sld [smem:[#allocation2]]  ;;  %v24_v0 = vld [vmem:[%s317_s1] sm:$0xff]  ;;  %v25_v1 = vld [vmem:[%s317_s1 + $0x8] sm:$0xff]  ;;  %v26_v2 = vld [vmem:[%s317_s1 + $0x10] sm:$0xff] }
   0x7   :  { %v27_v4 = vld [vmem:[%s317_s1 + $0x18] sm:$0xff]  ;;  %s119_s21 = sld [smem:[#allocation2 + $0x1]] }
   0x8   :  { %s267_s22 = sld [smem:[#allocation2 + $0x2]] }
   0x9   :  { %s121_s1 = sld [smem:[#allocation2 + $0x3]] }
   0xa   :  { %s122_s23 = sld [smem:[#allocation2 + $0x4]] }
   0xb   :  { %s123_s24 = sld [smem:[#allocation2 + $0x5]] }
   0xc   :  { %v35_v3 = vstv %s28_s13  ;;  %s124_s25 = sld [smem:[#allocation2 + $0x6]] }
   0xd   :  { %v36_v5 = vmul.f32 %v35_v3, %v24_v0  ;;  %v37_v6 = vmul.f32 %v35_v3, %v25_v1  ;;  %v38_v7 = vmul.f32 %v35_v3, %v26_v2  ;;  %v39_v10 = vmul.f32 %v35_v3, %v27_v4 }
   0xe   :  { %v52_v36 = vstv %s119_s21  ;;  %v57_v41 = vstv %s267_s22 }
   0xf   :  { %v125_v8 = vand.u32 2147483647, %v36_v5  ;;  %v127_v9 = vcvt.f32.s32 %v36_v5  ;;  %v135_v11 = vcvt.f32.s32 %v37_v6  ;;  %v130_v13 = vand.u32 2147483648, %v36_v5 }
  0x10   :  { %v133_v14 = vand.u32 2147483647, %v37_v6  ;;  %v138_v16 = vand.u32 2147483648, %v37_v6  ;;  %v143_v17 = vcvt.f32.s32 %v38_v7  ;;  %v141_v20 = vand.u32 2147483647, %v38_v7 }
  0x11   :  { %v128_v12 = vcvt.s32.f32 %v127_v9  ;;  %v136_v15 = vcvt.s32.f32 %v135_v11  ;;  %vm269_vm0 = vcmp.lt.f32.partialorder %v125_v8, 8388608.0  ;;  %v151_v21 = vcvt.f32.s32 %v39_v10 }
  0x12   :  { %v144_v23 = vcvt.s32.f32 %v143_v17  ;;  %v146_v24 = vand.u32 2147483648, %v38_v7  ;;  %v149_v25 = vand.u32 2147483647, %v39_v10  ;;  %vm134_vm1 = vcmp.lt.f32.partialorder %v133_v14, 8388608.0 }
  0x13   :  { %v129_v19 = vand.u32 2147483647, %v128_v12  ;;  %v137_v22 = vand.u32 2147483647, %v136_v15  ;;  %v152_v27 = vcvt.s32.f32 %v151_v21  ;;  %v154_v28 = vand.u32 2147483648, %v39_v10 }
  0x14   :  { %v145_v30 = vand.u32 2147483647, %v144_v23  ;;  %vm142_vm2 = vcmp.lt.f32.partialorder %v141_v20, 8388608.0  ;;  %vm150_vm3 = vcmp.lt.f32.partialorder %v149_v25, 8388608.0  ;;  %v62_v47 = vstv %s121_s1 }
  0x15   :  { %v131_v26 = vor.u32 %v130_v13, %v129_v19  ;;  %v139_v29 = vor.u32 %v138_v16, %v137_v22  ;;  %v153_v32 = vand.u32 2147483647, %v152_v27 }
  0x16   :  { %v147_v35 = vor.u32 %v146_v24, %v145_v30  ;;  %v79_v24 = vstv %s122_s23 }
  0x17   :  { %v132_v31 = vsel %vm269_vm0, %v131_v26, %v36_v5  ;;  %v140_v34 = vsel %vm134_vm1, %v139_v29, %v37_v6  ;;  %v155_v38 = vor.u32 %v154_v28, %v153_v32 }
  0x18   :  { %v44_v33 = vmax.f32 %v132_v31, -32768.0  ;;  %v45_v37 = vmax.f32 %v140_v34, -32768.0  ;;  %v148_v40 = vsel %vm142_vm2, %v147_v35, %v38_v7  ;;  %v88_v34 = vstv %s123_s24 }
  0x19   :  { %v46_v43 = vmax.f32 %v148_v40, -32768.0  ;;  %v156_v44 = vsel %vm150_vm3, %v155_v38, %v39_v10 }
  0x1a   :  { %v48_v39 = vmin.f32 %v44_v33, 32767.0  ;;  %v49_v42 = vmin.f32 %v45_v37, 32767.0  ;;  %v47_v46 = vmax.f32 %v156_v44, -32768.0 }
  0x1b   :  { %v50_v49 = vmin.f32 %v46_v43, 32767.0 }
  0x1c   :  { %v276_v45 = vmul.f32 %v52_v36, %v48_v39  ;;  %v278_v48 = vmul.f32 %v52_v36, %v49_v42  ;;  %v51_v51 = vmin.f32 %v47_v46, 32767.0 }
  0x1d   :  { %v282_v53 = vmul.f32 %v52_v36, %v50_v49 }
  0x1e   :  { %v58_v50 = vmul.f32 %v57_v41, %v276_v45  ;;  %v59_v52 = vmul.f32 %v57_v41, %v278_v48  ;;  %v284_v55 = vmul.f32 %v52_v36, %v51_v51 }
  0x1f   :  { %v60_v57 = vmul.f32 %v57_v41, %v282_v53 }
  0x20   :  { %v63_v54 = vmul.f32 %v62_v47, %v58_v50  ;;  %v64_v56 = vmul.f32 %v62_v47, %v59_v52  ;;  %v61_v60 = vmul.f32 %v57_v41, %v284_v55 }
  0x21   :  { %v65_v62 = vmul.f32 %v62_v47, %v60_v57 }
  0x22   :  { %v157_v58 = vand.u32 2147483647, %v63_v54  ;;  %v159_v59 = vcvt.f32.s32 %v63_v54  ;;  %v167_v61 = vcvt.f32.s32 %v64_v56  ;;  %v162_v0 = vand.u32 2147483648, %v63_v54 }
  0x23   :  { %v165_v1 = vand.u32 2147483647, %v64_v56  ;;  %v66_v2 = vmul.f32 %v62_v47, %v61_v60  ;;  %v170_v4 = vand.u32 2147483648, %v64_v56  ;;  %v175_v5 = vcvt.f32.s32 %v65_v62 }
  0x24   :  { %v160_v63 = vcvt.s32.f32 %v159_v59  ;;  %v168_v3 = vcvt.s32.f32 %v167_v61  ;;  %vm288_vm4 = vcmp.lt.f32.partialorder %v157_v58, 8388608.0  ;;  %v173_v8 = vand.u32 2147483647, %v65_v62 }
  0x25   :  { %v183_v9 = vcvt.f32.s32 %v66_v2  ;;  %v176_v11 = vcvt.s32.f32 %v175_v5  ;;  %v178_v12 = vand.u32 2147483648, %v65_v62  ;;  %v181_v13 = vand.u32 2147483647, %v66_v2 }
  0x26   :  { %v161_v7 = vand.u32 2147483647, %v160_v63  ;;  %v169_v10 = vand.u32 2147483647, %v168_v3  ;;  %vm166_vm5 = vcmp.lt.f32.partialorder %v165_v1, 8388608.0  ;;  %v186_v16 = vand.u32 2147483648, %v66_v2 }
  0x27   :  { %v184_v15 = vcvt.s32.f32 %v183_v9  ;;  %v177_v18 = vand.u32 2147483647, %v176_v11  ;;  %vm174_vm6 = vcmp.lt.f32.partialorder %v173_v8, 8388608.0  ;;  %vm182_vm7 = vcmp.lt.f32.partialorder %v181_v13, 8388608.0 }
  0x28   :  { %v163_v14 = vor.u32 %v162_v0, %v161_v7  ;;  %v171_v17 = vor.u32 %v170_v4, %v169_v10  ;;  %v105_v11 = vstv %s124_s25 }
  0x29   :  { %v185_v20 = vand.u32 2147483647, %v184_v15  ;;  %v179_v23 = vor.u32 %v178_v12, %v177_v18 }
  0x2a   :  { %v164_v19 = vsel %vm288_vm4, %v163_v14, %v63_v54  ;;  %v172_v22 = vsel %vm166_vm5, %v171_v17, %v64_v56 }
  0x2b   :  { %v71_v21 = vmax.f32 %v164_v19, -32768.0  ;;  %v72_v25 = vmax.f32 %v172_v22, -32768.0  ;;  %v187_v26 = vor.u32 %v186_v16, %v185_v20  ;;  %v180_v28 = vsel %vm174_vm6, %v179_v23, %v65_v62 }
  0x2c   :  { %v73_v30 = vmax.f32 %v180_v28, -32768.0 }
  0x2d   :  { %v75_v27 = vmin.f32 %v71_v21, 32767.0  ;;  %v76_v29 = vmin.f32 %v72_v25, 32767.0  ;;  %v188_v31 = vsel %vm182_vm7, %v187_v26, %v66_v2 }
  0x2e   :  { %v74_v33 = vmax.f32 %v188_v31, -32768.0  ;;  %v77_v36 = vmin.f32 %v73_v30, 32767.0 }
  0x2f   :  { %v80_v32 = vmul.f32 %v79_v24, %v75_v27  ;;  %v81_v35 = vmul.f32 %v79_v24, %v76_v29 }
  0x30   :  { %v78_v38 = vmin.f32 %v74_v33, 32767.0  ;;  %v82_v40 = vmul.f32 %v79_v24, %v77_v36 }
  0x31   :  { %v84_v37 = vmax.f32 %v276_v45, %v80_v32  ;;  %v85_v39 = vmax.f32 %v278_v48, %v81_v35 }
  0x32   :  { %v83_v42 = vmul.f32 %v79_v24, %v78_v38  ;;  %v86_v44 = vmax.f32 %v282_v53, %v82_v40 }
  0x33   :  { %v89_v41 = vmul.f32 %v88_v34, %v84_v37  ;;  %v90_v43 = vmul.f32 %v88_v34, %v85_v39 }
  0x34   :  { %v87_v49 = vmax.f32 %v284_v55, %v83_v42  ;;  %v91_v51 = vmul.f32 %v88_v34, %v86_v44 }
  0x35   :  { %v189_v46 = vand.u32 2147483647, %v89_v41  ;;  %v191_v47 = vcvt.f32.s32 %v89_v41  ;;  %v199_v50 = vcvt.f32.s32 %v90_v43  ;;  %v194_v54 = vand.u32 2147483648, %v89_v41 }
  0x36   :  { %v197_v56 = vand.u32 2147483647, %v90_v43  ;;  %v92_v45 = vmul.f32 %v88_v34, %v87_v49  ;;  %v202_v58 = vand.u32 2147483648, %v90_v43  ;;  %v207_v48 = vcvt.f32.s32 %v91_v51 }
  0x37   :  { %v192_v52 = vcvt.s32.f32 %v191_v47  ;;  %v200_v57 = vcvt.s32.f32 %v199_v50  ;;  %vm298_vm8 = vcmp.lt.f32.partialorder %v189_v46, 8388608.0  ;;  %v205_v53 = vand.u32 2147483647, %v91_v51 }
  0x38   :  { %v215_v61 = vcvt.f32.s32 %v92_v45  ;;  %v208_v63 = vcvt.s32.f32 %v207_v48  ;;  %v210_v55 = vand.u32 2147483648, %v91_v51  ;;  %v213_v0 = vand.u32 2147483647, %v92_v45 }
  0x39   :  { %v193_v60 = vand.u32 2147483647, %v192_v52  ;;  %v201_v62 = vand.u32 2147483647, %v200_v57  ;;  %vm198_vm9 = vcmp.lt.f32.partialorder %v197_v56, 8388608.0  ;;  %v218_v3 = vand.u32 2147483648, %v92_v45 }
  0x3a   :  { %v216_v2 = vcvt.s32.f32 %v215_v61  ;;  %v209_v5 = vand.u32 2147483647, %v208_v63  ;;  %vm206_vm10 = vcmp.lt.f32.partialorder %v205_v53, 8388608.0  ;;  %vm214_vm11 = vcmp.lt.f32.partialorder %v213_v0, 8388608.0 }
  0x3b   :  { %v195_v1 = vor.u32 %v194_v54, %v193_v60  ;;  %v203_v4 = vor.u32 %v202_v58, %v201_v62 }
  0x3c   :  { %v217_v7 = vand.u32 2147483647, %v216_v2  ;;  %v211_v10 = vor.u32 %v210_v55, %v209_v5 }
  0x3d   :  { %v196_v6 = vsel %vm298_vm8, %v195_v1, %v89_v41  ;;  %v204_v9 = vsel %vm198_vm9, %v203_v4, %v90_v43 }
  0x3e   :  { %v97_v8 = vmax.f32 %v196_v6, -128.0  ;;  %v98_v12 = vmax.f32 %v204_v9, -128.0  ;;  %v219_v13 = vor.u32 %v218_v3, %v217_v7  ;;  %v212_v15 = vsel %vm206_vm10, %v211_v10, %v91_v51 }
  0x3f   :  { %v99_v17 = vmax.f32 %v212_v15, -128.0 }
  0x40   :  { %v101_v14 = vmin.f32 %v97_v8, 127.0  ;;  %v102_v16 = vmin.f32 %v98_v12, 127.0  ;;  %v220_v18 = vsel %vm214_vm11, %v219_v13, %v92_v45 }
  0x41   :  { %v100_v20 = vmax.f32 %v220_v18, -128.0  ;;  %v103_v22 = vmin.f32 %v99_v17, 127.0 }
  0x42   :  { %v106_v19 = vmul.f32 %v105_v11, %v101_v14  ;;  %v107_v21 = vmul.f32 %v105_v11, %v102_v16 }
  0x43   :  { %v104_v23 = vmin.f32 %v100_v20, 127.0  ;;  %v108_v24 = vmul.f32 %v105_v11, %v103_v22 }
  0x44   :  { %110 = vst [vmem:[%s318_s2] sm:$0xff] %v106_v19 }
  0x45   :  { %111 = vst [vmem:[%s318_s2 + $0x8] sm:$0xff] %v107_v21  ;;  %v109_v25 = vmul.f32 %v105_v11, %v104_v23 }
  0x46   :  { %112 = vst [vmem:[%s318_s2 + $0x10] sm:$0xff] %v108_v24 }
  0x47   :  { %113 = vst [vmem:[%s318_s2 + $0x18] sm:$0xff] %v109_v25 }
  0x48   :  { %118 = vsyncpa [#allocation3], 1 }

// kernel: _flexml_quant_leaky_relu.2
= control target key start
LH: loop header
LB: loop body
LE: loop exit
PB: predicated region body
PF: predicated region fallthrough
CT: control target
= control target key end

     0   :  { %8 = vsyncpa [#allocation3], 0  ;;  %s185_s0 = inlined_call_operand.vmem [shape: f32[8,512], index: 0, kind: input, shape index: {}]   ;;  %s186_s1 = inlined_call_operand.hbm [shape: f32[1,1], index: 1, kind: output, shape index: {0}]   ;;  %s187_s2 = inlined_call_operand.hbm [shape: f32[1,1], index: 2, kind: output, shape index: {1}]  }
   0x1   :  { %v12_v0 = vld [vmem:[%s185_s0] sm:$0xff]  ;;  %v13_v1 = vld [vmem:[%s185_s0 + $0x8] sm:$0xff]  ;;  %v14_v2 = vld [vmem:[%s185_s0 + $0x10] sm:$0xff] }
   0x2   :  { %v15_v3 = vld [vmem:[%s185_s0 + $0x18] sm:$0xff]  ;;  %v16_v4 = vmax.f32 %v12_v0, %v13_v1 }
   0x3   :  { %9 = vsyncpa [#allocation5], 0  ;;  %v17_v5 = vmax.f32 %v14_v2, %v15_v3  ;;  %v29_v7 = vmin.f32 %v12_v0, %v13_v1  ;;  %v30_v8 = vmin.f32 %v14_v2, %v15_v3  ;;  %s150_s0 = smov [#allocation2]   ;;  %s67_s20 = sshll.u32 %s186_s1, 4  ;;  %vm46_vm0 = vcmask 0   ;;  %s68_s20 = int_to_ptr.hbm [resolvable:$true] %s67_s20 }
   0x4   :  { %s65_s17 = sshll.u32 %s150_s0, 4  ;;  %s151_s22 = smov [#allocation4]   ;;  %s66_s17 = int_to_ptr.vmem [resolvable:$true] %s65_s17 }
   0x5   :  { %v18_v6 = vmax.f32 %v16_v4, %v17_v5  ;;  %v31_v9 = vmin.f32 %v29_v7, %v30_v8  ;;  %s76_s23 = sshll.u32 %s151_s22, 4  ;;  %s78_s26 = sshll.u32 %s187_s2, 4  ;;  %s77_s23 = int_to_ptr.vmem [resolvable:$true] %s76_s23  ;;  %s79_s26 = int_to_ptr.hbm [resolvable:$true] %s78_s26 }
   0x7   :  { %19 = vmax.xlane.f32.xlu0 %v18_v6 }
   0xf   :  { %32 = vmin.xlane.f32.xlu0 %v31_v9 }
  0x7a   :  { %v20_v10 = vpop.xlane.xlu0 %19 }
  0x7b   :  { %v21_v11 = vrot.slane %v20_v10, 4 }
  0x7d   :  { %v22_v12 = vmax.f32 %v20_v10, %v21_v11 }
  0x7f   :  { %v23_v13 = vrot.slane %v22_v12, 2 }
  0x81   :  { %v24_v14 = vmax.f32 %v22_v12, %v23_v13 }
  0x82   :  { %v33_v15 = vpop.xlane.xlu0 %32 }
  0x83   :  { %v34_v16 = vrot.slane %v33_v15, 4  ;;  %v25_v17 = vrot.slane %v24_v14, 1 }
  0x85   :  { %v35_v18 = vmin.f32 %v33_v15, %v34_v16  ;;  %v26_v19 = vmax.f32 %v24_v14, %v25_v17 }
  0x87   :  { %v36_v20 = vrot.slane %v35_v18, 2  ;;  %92 = vpush %v26_v19 }
  0x89   :  { %v37_v21 = vmin.f32 %v35_v18, %v36_v20 }
  0x8b   :  { %v38_v22 = vrot.slane %v37_v21, 1 }
  0x8d   :  { %v39_v23 = vmin.f32 %v37_v21, %v38_v22 }
  0x8f   :  { %94 = vpush %v39_v23 }
  0xb8   :  { %s93_s21 = spop %92 }
  0xb9   :  { %v28_v24 = vstv %s93_s21 }
  0xba   :  { %47 = vst.msk [vmem:[#allocation2] sm:$0x1] %vm46_vm0, %v28_v24 }
  0xbb   :  { %70 = dma.vmem_to_hbm [thread:$0]  %s66_s17, 16, %s68_s20, [#allocation3]  }
  0xc0   :  { %s95_s27 = spop %94 }
  0xc1   :  { %v41_v25 = vstv %s95_s27 }
  0xc2   :  { %48 = vst.msk [vmem:[#allocation4] sm:$0x1] %vm46_vm0, %v41_v25 }
  0xc3   :  { %81 = dma.vmem_to_hbm [thread:$0]  %s77_s23, 16, %s79_s26, [#allocation5]  }
  0xc4   :  { %146 = dma.done.wait [#allocation3], 16  }
  0xc5   :  { %147 = vsyncadd [#allocation3], 4294967280 }
  0xc6   :  { %148 = dma.done.wait [#allocation5], 16  }
  0xc7   :  { %149 = vsyncadd [#allocation5], 4294967280 }
  0xc8   :  { %90 = vsyncpa [#allocation3], 1 }
  0xc9   :  { %91 = vsyncpa [#allocation5], 1 }

</bundles_post_ra>
